<compile_context>
chip_gen: v6e
topology: v6e:2x2x1
jax: 0.10.0
libtpu: 0.0.40
codegen_flags: <defaults>
</compile_context>

<pallas_src>
import functools

import jax
import jax.numpy as jnp
from jax import lax
from jax.experimental import pallas as pl
from jax.experimental.pallas import tpu as pltpu

# ---- model hyper-parameters (synthetic, deterministic) ----------------------
D_CLIP = 768          # CLIP ViT-L/14 visual embedding dim
N_CONCEPTS = 128      # len(rival_atributes)  (synthetic choice, lane-friendly)
N_CLASSES = 10
N_CLASSES_PAD = 128   # lane-dense padded classifier width
LN_EPS = 1e-5

TB_DEFAULT = 1024     # batch tile (big tile -> ~86% of HBM roofline per reference data)


def _ceil_to(x, m):
    return ((x + m - 1) // m) * m


def cbm_kernel(vf_ref, ce_t_ref, w_t_ref, b_ref, act_ref, logits_ref):
    """Per-batch-tile: L2-norm -> concept matmul (bf16 MXU) -> LN -> folded Linear."""
    vf = vf_ref[...]                                              # (TB, D) bf16 (or f32)

    # --- L2 normalization factor (matches PyTorch x / x.norm(dim=-1)) ------
    # Sum-of-squares accumulated in f32 (single upcast inside VMEM).
    # NOTE: no epsilon, matching the reference; an all-zero row gives Inf/NaN
    # exactly as the PyTorch module would.
    vf32 = vf.astype(jnp.float32)
    sq = jnp.sum(vf32 * vf32, axis=-1, keepdims=True)             # (TB, 1) f32
    inv_norm = lax.rsqrt(sq)                                      # (TB, 1) f32

    # --- concept activations: (vf @ ce_t) * inv_norm ------------------------
    # Per-row scale applied AFTER the contraction (commutes with it): scales a
    # (TB, C) tensor instead of the (TB, D) one, and vf goes straight to the MXU.
    vf_bf = vf if vf.dtype == jnp.bfloat16 else vf.astype(jnp.bfloat16)
    act = jnp.dot(vf_bf, ce_t_ref[...],
                  preferred_element_type=jnp.float32)             # (TB, C) f32
    act = act * inv_norm
    act_ref[...] = act

    # --- classifier: Flatten (no-op on (TB,C)) -> LayerNorm(C) -> Linear ---
    # gamma/beta are pre-folded into w_t / b, so only the standardization
    # (center + rsqrt(var)) happens here. Elementwise / rsqrt math stays f32.
    mean = jnp.mean(act, axis=-1, keepdims=True)                  # (TB, 1)
    centered = act - mean
    var = jnp.mean(centered * centered, axis=-1, keepdims=True)   # (TB, 1)
    z = centered * lax.rsqrt(var + LN_EPS)                        # (TB, C) f32

    logits = jnp.dot(z.astype(jnp.bfloat16), w_t_ref[...],
                     preferred_element_type=jnp.float32)          # (TB, 128) f32
    logits_ref[...] = (logits + b_ref[...]).astype(logits_ref.dtype)


def prepare_cbm_params(concept_embeddings, ln_gamma, ln_beta, lin_w, lin_b):
    """One-time parameter layout prep (hoisted out of the forward path).

    concept_embeddings: (C, 768) f32   (PyTorch param layout)
    ln_gamma, ln_beta:  (C,)     f32
    lin_w:              (10, C)  f32   (PyTorch nn.Linear weight layout)
    lin_b:              (10,)    f32
    """
    C = concept_embeddings.shape[0]
    ce_t = concept_embeddings.T.astype(jnp.bfloat16)          # (D, C) bf16 MXU operand

    # Fold the LayerNorm affine into the classifier:
    #   normed = z * gamma + beta ;  logits = normed @ W^T + b
    #     =>  logits = z @ (diag(gamma) @ W^T) + (beta @ W^T + b)
    w_t = lin_w.T.astype(jnp.float32)                          # (C, 10)
    w_fold = w_t * ln_gamma.reshape(C, 1).astype(jnp.float32)  # (C, 10)
    b_fold = lin_b.astype(jnp.float32) + ln_beta.astype(jnp.float32) @ w_t  # (10,)

    # Zero-pad classifier to a lane-dense width (128); padded columns are zero
    # in both weight and bias, so sliced logits are exact.
    w_pad = jnp.zeros((C, N_CLASSES_PAD), jnp.float32).at[:, :N_CLASSES].set(w_fold)
    b_pad = jnp.zeros((1, N_CLASSES_PAD), jnp.float32).at[:, :N_CLASSES].set(b_fold)
    return dict(ce_t=ce_t, w_t=w_pad.astype(jnp.bfloat16), b=b_pad)


@functools.partial(jax.jit, static_argnames=("block_b",))
def standard_cbm_forward(visual_features, params, *, block_b=TB_DEFAULT):
    """Forward pass for steps 2-4.

    visual_features: (B, 768) bf16 (preferred; f32 also accepted) — output of the
                     frozen CLIP encoder. Do NOT pre-cast in the wrapper.
    params:          dict from prepare_cbm_params
    Returns: (concept_activations (B, C) f32, logits (B, 10) f32)
    """
    B, D = visual_features.shape
    C = params["ce_t"].shape[1]

    # Batch tile: multiple of the sublane-pack granularity (16 for bf16, 8 for
    # f32), capped at block_b.  When the batch is large enough, force an even
    # grid of >= 2 steps so both v7x TensorCores get balanced work.
    g = 16 if visual_features.dtype == jnp.bfloat16 else 8
    tb = min(block_b, _ceil_to(B, g))
    if B >= 2 * g:
        n_steps = max(2, -(-B // tb))
        n_steps = _ceil_to(n_steps, 2)                      # even step count
        tb = min(tb, _ceil_to(-(-B // n_steps), g))
    b_pad = _ceil_to(B, tb)
    if b_pad != B:
        # Pad value 1.0 keeps rsqrt finite on pad rows (sliced off afterwards).
        visual_features = jnp.pad(visual_features, ((0, b_pad - B), (0, 0)),
                                  constant_values=1.0)
    grid = (b_pad // tb,)

    const = lambda i: (0, 0)   # weights: resident, never re-fetched across the grid
    act, logits = pl.pallas_call(
        cbm_kernel,
        out_shape=(
            jax.ShapeDtypeStruct((b_pad, C), jnp.float32),
            jax.ShapeDtypeStruct((b_pad, N_CLASSES_PAD), jnp.bfloat16),
        ),
        grid_spec=pltpu.PrefetchScalarGridSpec(
            num_scalar_prefetch=0,
            grid=grid,
            in_specs=[
                pl.BlockSpec((tb, D), lambda i: (i, 0)),          # vf tile (bf16)
                pl.BlockSpec((D, C), const),                      # ce_t  (bf16)
                pl.BlockSpec((C, N_CLASSES_PAD), const),          # folded W^T (bf16)
                pl.BlockSpec((1, N_CLASSES_PAD), const),          # folded bias (f32)
            ],
            out_specs=(
                pl.BlockSpec((tb, C), lambda i: (i, 0)),
                pl.BlockSpec((tb, N_CLASSES_PAD), lambda i: (i, 0)),
            ),
        ),
        compiler_params=pltpu.CompilerParams(
            dimension_semantics=("parallel",),                    # megacore on v7x
        ),
    )(visual_features, params["ce_t"], params["w_t"], params["b"])

    return act[:B], logits[:B, :N_CLASSES].astype(jnp.float32)


if __name__ == "__main__":
    key = jax.random.PRNGKey(0)
    k_vf, k_ce, k_w, k_b = jax.random.split(key, 4)

    B = 8
    # Synthetic "visual features" standing in for clip_model.encode_image(images),
    # produced in bf16 by the upstream encoder (no wrapper-side cast).
    visual_features = jax.random.normal(
        k_vf, (B, D_CLIP), dtype=jnp.float32).astype(jnp.bfloat16)

    # concept_embeddings: xavier_uniform_ on (N_CONCEPTS, 768)
    xav_bound = (6.0 / (N_CONCEPTS + D_CLIP)) ** 0.5
    concept_embeddings = jax.random.uniform(
        k_ce, (N_CONCEPTS, D_CLIP), dtype=jnp.float32,
        minval=-xav_bound, maxval=xav_bound)

    # LayerNorm affine params (default init: gamma=1, beta=0)
    ln_gamma = jnp.ones((N_CONCEPTS,), dtype=jnp.float32)
    ln_beta = jnp.zeros((N_CONCEPTS,), dtype=jnp.float32)

    # Linear(N_CONCEPTS, 10): kaiming-uniform-ish deterministic init
    lin_bound = (1.0 / N_CONCEPTS) ** 0.5
    lin_w = jax.random.uniform(k_w, (N_CLASSES, N_CONCEPTS), dtype=jnp.float32,
                               minval=-lin_bound, maxval=lin_bound)
    lin_b = jax.random.uniform(k_b, (N_CLASSES,), dtype=jnp.float32,
                               minval=-lin_bound, maxval=lin_bound)

    params = prepare_cbm_params(concept_embeddings, ln_gamma, ln_beta, lin_w, lin_b)
    act, logits = standard_cbm_forward(visual_features, params)
    jax.block_until_ready((act, logits))

    # Pure-JAX f32 reference (from the same bf16 features the kernel sees;
    # bf16 MXU -> relaxed tolerance).
    vf_f32 = visual_features.astype(jnp.float32)
    vfn = vf_f32 / jnp.linalg.norm(vf_f32, axis=-1, keepdims=True)
    act_ref = vfn @ concept_embeddings.T
    mu = jnp.mean(act_ref, axis=-1, keepdims=True)
    var = jnp.mean((act_ref - mu) ** 2, axis=-1, keepdims=True)
    normed = (act_ref - mu) / jnp.sqrt(var + LN_EPS) * ln_gamma + ln_beta
    logits_ref = normed @ lin_w.T + lin_b

    assert act.shape == (B, N_CONCEPTS) and logits.shape == (B, N_CLASSES)
    assert jnp.allclose(act, act_ref, atol=2e-2, rtol=2e-2), \
        float(jnp.max(jnp.abs(act - act_ref)))
    assert jnp.allclose(logits, logits_ref, atol=5e-2, rtol=5e-2), \
        float(jnp.max(jnp.abs(logits - logits_ref)))

    print("KERNEL_OK")
</pallas_src>

<mosaic_0001>
module attributes {stable_mosaic.version = 11 : i64} {
  func.func @cbm_kernel(%arg0: i32, %arg1: memref<16x768xbf16, #tpu.memory_space<vmem>>, %arg2: memref<768x128xbf16, #tpu.memory_space<vmem>>, %arg3: memref<128x128xbf16, #tpu.memory_space<vmem>>, %arg4: memref<1x128xf32, #tpu.memory_space<vmem>>, %arg5: memref<16x128xf32, #tpu.memory_space<vmem>>, %arg6: memref<16x128xbf16, #tpu.memory_space<vmem>>) attributes {dimension_semantics = [#tpu.dimension_semantics<parallel>], iteration_bounds = array<i64: 1>, scalar_prefetch = 0 : i64, scratch_operands = 0 : i64, tpu.core_type = #tpu.core_type<tc>, window_params = [{transform_indices = @transform_0, window_bounds = array<i64: 16, 768>}, {pipeline_mode = #tpu.pipeline_mode<synchronous>, transform_indices = @transform_1, window_bounds = array<i64: 768, 128>}, {pipeline_mode = #tpu.pipeline_mode<synchronous>, transform_indices = @transform_2, window_bounds = array<i64: 128, 128>}, {pipeline_mode = #tpu.pipeline_mode<synchronous>, transform_indices = @transform_3, window_bounds = array<i64: 1, 128>}, {transform_indices = @transform_4, window_bounds = array<i64: 16, 128>}, {transform_indices = @transform_5, window_bounds = array<i64: 16, 128>}]} {
    %c0 = arith.constant 0 : index
    %c0_0 = arith.constant 0 : index
    %0 = vector.load %arg1[%c0, %c0_0] : memref<16x768xbf16, #tpu.memory_space<vmem>>, vector<16x768xbf16>
    %1 = arith.extf %0 : vector<16x768xbf16> to vector<16x768xf32>
    %2 = arith.mulf %1, %1 : vector<16x768xf32>
    %cst = arith.constant dense<0.000000e+00> : vector<16xf32>
    %3 = vector.multi_reduction <add>, %2, %cst [1] : vector<16x768xf32> to vector<16xf32>
    %4 = vector.shape_cast %3 : vector<16xf32> to vector<16x1xf32>
    %5 = math.rsqrt %4 : vector<16x1xf32>
    %c0_1 = arith.constant 0 : index
    %c0_2 = arith.constant 0 : index
    %6 = vector.load %arg2[%c0_1, %c0_2] : memref<768x128xbf16, #tpu.memory_space<vmem>>, vector<768x128xbf16>
    %cst_3 = arith.constant dense<0.000000e+00> : vector<16x128xf32>
    %7 = tpu.matmul %0, %6, %cst_3 {dimension_numbers = #tpu.dot_dimension_numbers<[1], [0], [0], [1], [0, 0, 1, 1], [], []>} : vector<16x768xbf16>, vector<768x128xbf16>, vector<16x128xf32> -> vector<16x128xf32>
    %8 = vector.broadcast %5 : vector<16x1xf32> to vector<16x128xf32>
    %9 = arith.mulf %7, %8 : vector<16x128xf32>
    %c0_4 = arith.constant 0 : index
    %c0_5 = arith.constant 0 : index
    %10 = vector.load %arg5[%c0_4, %c0_5] : memref<16x128xf32, #tpu.memory_space<vmem>>, vector<16x128xf32>
    tpu.vector_store %arg5[%c0_4, %c0_5], %9 {strides = array<i32>} : memref<16x128xf32, #tpu.memory_space<vmem>>, vector<16x128xf32>,
    %cst_6 = arith.constant dense<0.000000e+00> : vector<16xf32>
    %11 = vector.multi_reduction <add>, %9, %cst_6 [1] : vector<16x128xf32> to vector<16xf32>
    %12 = vector.shape_cast %11 : vector<16xf32> to vector<16x1xf32>
    %cst_7 = arith.constant 1.280000e+02 : f32
    %13 = vector.broadcast %cst_7 : f32 to vector<16x1xf32>
    %14 = arith.divf %12, %13 : vector<16x1xf32>
    %15 = vector.broadcast %14 : vector<16x1xf32> to vector<16x128xf32>
    %16 = arith.subf %9, %15 : vector<16x128xf32>
    %17 = arith.mulf %16, %16 : vector<16x128xf32>
    %cst_8 = arith.constant dense<0.000000e+00> : vector<16xf32>
    %18 = vector.multi_reduction <add>, %17, %cst_8 [1] : vector<16x128xf32> to vector<16xf32>
    %19 = vector.shape_cast %18 : vector<16xf32> to vector<16x1xf32>
    %cst_9 = arith.constant 1.280000e+02 : f32
    %20 = vector.broadcast %cst_9 : f32 to vector<16x1xf32>
    %21 = arith.divf %19, %20 : vector<16x1xf32>
    %cst_10 = arith.constant 9.99999974E-6 : f32
    %22 = vector.broadcast %cst_10 : f32 to vector<16x1xf32>
    %23 = arith.addf %21, %22 : vector<16x1xf32>
    %24 = math.rsqrt %23 : vector<16x1xf32>
    %25 = vector.broadcast %24 : vector<16x1xf32> to vector<16x128xf32>
    %26 = arith.mulf %16, %25 : vector<16x128xf32>
    %27 = arith.truncf %26 : vector<16x128xf32> to vector<16x128xbf16>
    %c0_11 = arith.constant 0 : index
    %c0_12 = arith.constant 0 : index
    %28 = vector.load %arg3[%c0_11, %c0_12] : memref<128x128xbf16, #tpu.memory_space<vmem>>, vector<128x128xbf16>
    %cst_13 = arith.constant dense<0.000000e+00> : vector<16x128xf32>
    %29 = tpu.matmul %27, %28, %cst_13 {dimension_numbers = #tpu.dot_dimension_numbers<[1], [0], [0], [1], [0, 0, 1, 1], [], []>} : vector<16x128xbf16>, vector<128x128xbf16>, vector<16x128xf32> -> vector<16x128xf32>
    %c0_14 = arith.constant 0 : index
    %c0_15 = arith.constant 0 : index
    %30 = vector.load %arg4[%c0_14, %c0_15] : memref<1x128xf32, #tpu.memory_space<vmem>>, vector<1x128xf32>
    %31 = vector.broadcast %30 : vector<1x128xf32> to vector<16x128xf32>
    %32 = arith.addf %29, %31 : vector<16x128xf32>
    %33 = arith.truncf %32 : vector<16x128xf32> to vector<16x128xbf16>
    %c0_16 = arith.constant 0 : index
    %c0_17 = arith.constant 0 : index
    %34 = vector.load %arg6[%c0_16, %c0_17] : memref<16x128xbf16, #tpu.memory_space<vmem>>, vector<16x128xbf16>
    tpu.vector_store %arg6[%c0_16, %c0_17], %33 {strides = array<i32>} : memref<16x128xbf16, #tpu.memory_space<vmem>>, vector<16x128xbf16>,
    return
  }
  func.func @transform_0(%arg0: i32) -> (i32, i32) {
    %c0_i32 = arith.constant 0 : i32
    %c0_i32_0 = arith.constant 0 : i32
    return %arg0, %c0_i32 : i32, i32
  }
  func.func @transform_1(%arg0: i32) -> (i32, i32) {
    %c0_i32 = arith.constant 0 : i32
    %c0_i32_0 = arith.constant 0 : i32
    %c0_i32_1 = arith.constant 0 : i32
    return %c0_i32, %c0_i32_0 : i32, i32
  }
  func.func @transform_2(%arg0: i32) -> (i32, i32) {
    %c0_i32 = arith.constant 0 : i32
    %c0_i32_0 = arith.constant 0 : i32
    %c0_i32_1 = arith.constant 0 : i32
    return %c0_i32, %c0_i32_0 : i32, i32
  }
  func.func @transform_3(%arg0: i32) -> (i32, i32) {
    %c0_i32 = arith.constant 0 : i32
    %c0_i32_0 = arith.constant 0 : i32
    %c0_i32_1 = arith.constant 0 : i32
    return %c0_i32, %c0_i32_0 : i32, i32
  }
  func.func @transform_4(%arg0: i32) -> (i32, i32) {
    %c0_i32 = arith.constant 0 : i32
    %c0_i32_0 = arith.constant 0 : i32
    return %arg0, %c0_i32 : i32, i32
  }
  func.func @transform_5(%arg0: i32) -> (i32, i32) {
    %c0_i32 = arith.constant 0 : i32
    %c0_i32_0 = arith.constant 0 : i32
    return %arg0, %c0_i32 : i32, i32
  }
}

</mosaic_0001>

<bundles_post_ra>
// kernel: standard_cbm_forward.1
= control target key start
LH: loop header
LB: loop body
LE: loop exit
PB: predicated region body
PF: predicated region fallthrough
CT: control target
= control target key end

     0   :  { %11 = vsyncpa [#allocation3], 0  ;;  %s1040_s18 = smov [#allocation2]   ;;  %s1132_s0 = inlined_call_operand.vmem [shape: bf16[16,768], index: 0, kind: input, shape index: {}]   ;;  %s1133_s1 = inlined_call_operand.hbm [shape: bf16[768,128], index: 1, kind: input, shape index: {}]   ;;  %s1134_s2 = inlined_call_operand.vmem [shape: bf16[128,128], index: 2, kind: input, shape index: {}]   ;;  %s1135_s3 = inlined_call_operand.vmem [shape: f32[1,128], index: 3, kind: input, shape index: {}]   ;;  %s1136_s4 = inlined_call_operand.vmem [shape: f32[16,128], index: 4, kind: output, shape index: {0}]   ;;  %s1137_s5 = inlined_call_operand.vmem [shape: bf16[16,128], index: 5, kind: output, shape index: {1}]  }
   0x1   :  { %s19_s19 = sshll.u32 %s1040_s18, 4  ;;  %s20_s19 = int_to_ptr.vmem [resolvable:$true] %s19_s19 }
   0x2   :  { %s1026_s20 = scalar_lea.vmem %s20_s19, 6144  ;;  %p1031_p1 = scmp.lt.s32.totalorder %s20_s19, %s20_s19 }
   0x3   :  { %p1027_p0 = scmp.ne.s32.totalorder %s20_s19, %s1026_s20  ;;  %p1032_p2 = scmp.lt.s32.totalorder %s1026_s20, %s1026_s20 }
   0x5   :  { %p1033_p3 = por %p1032_p2, %p1031_p1 }
   0x7   :  { %p1034_p4 = pnand %p1033_p3, %p1027_p0 }
   0x9   :  { %1037 = shalt.err (!%p1034_p4)
}
   0xa   :  { %s1041_s21 = smov 64   ;;  %s1042_s22 = smov 4  }
   0xb   :  { %25 = dma.hbm_to_vmem [thread:$0]  %s1133_s1, 6144, %s20_s19, [#allocation3], %s1041_s21, %s1041_s21, %s1042_s22  }
   0xc   :  { %1038 = dma.done.wait [#allocation3], 6144  }
   0xd   :  { %1039 = vsyncadd [#allocation3], 4294961152  ;;  %v948_v0 = vld [vmem:[#allocation2 + $0x78] sm:$0xff]   ;;  %v952_v4 = vld [vmem:[#allocation2 + $0x70] sm:$0xff]   ;;  %vm1044_vm0 = vmmov 0  }
   0xe   :  { %v949_v1 = vld [vmem:[#allocation2 + $0xf8] sm:$0xff]   ;;  %848 = vmatprep.subr.bf16.mxu0 %v948_v0  ;;  %v953_v5 = vld [vmem:[#allocation2 + $0xf0] sm:$0xff]   ;;  %v956_v8 = vld [vmem:[#allocation2 + $0x68] sm:$0xff]  }
   0xf   :  { %v950_v2 = vld [vmem:[#allocation2 + $0x38] sm:$0xff]   ;;  %870 = vmatprep.subr.bf16.mxu1 %v949_v1  ;;  %v954_v6 = vld [vmem:[#allocation2 + $0x30] sm:$0xff]   ;;  %v957_v9 = vld [vmem:[#allocation2 + $0xe8] sm:$0xff]  }
  0x10   :  { %v951_v3 = vld [vmem:[#allocation2 + $0xb8] sm:$0xff]   ;;  %849 = vmatpush3.bf16.msra.mxu0 %v950_v2  ;;  %v955_v7 = vld [vmem:[#allocation2 + $0xb0] sm:$0xff]   ;;  %v958_v10 = vld [vmem:[#allocation2 + $0x28] sm:$0xff]  }
  0x11   :  { %871 = vmatpush3.bf16.msra.mxu1 %v951_v3  ;;  %850 = vmatprep.subr.bf16.mxu0 %v952_v4  ;;  %v959_v11 = vld [vmem:[#allocation2 + $0xa8] sm:$0xff]   ;;  %v960_v12 = vld [vmem:[#allocation2 + $0x60] sm:$0xff]   ;;  %v964_v16 = vld [vmem:[#allocation2 + $0x58] sm:$0xff]  }
  0x12   :  { %872 = vmatprep.subr.bf16.mxu1 %v953_v5  ;;  %v961_v13 = vld [vmem:[#allocation2 + $0xe0] sm:$0xff]   ;;  %v965_v17 = vld [vmem:[#allocation2 + $0xd8] sm:$0xff]   ;;  %v968_v20 = vld [vmem:[#allocation2 + $0x50] sm:$0xff]  }
  0x13   :  { %v962_v14 = vld [vmem:[#allocation2 + $0x20] sm:$0xff]   ;;  %v966_v18 = vld [vmem:[#allocation2 + $0x18] sm:$0xff]   ;;  %v969_v21 = vld [vmem:[#allocation2 + $0xd0] sm:$0xff]  }
  0x14   :  { %851 = vmatpush3.bf16.msra.mxu0 %v954_v6  ;;  %v963_v15 = vld [vmem:[#allocation2 + $0xa0] sm:$0xff]   ;;  %v967_v19 = vld [vmem:[#allocation2 + $0x98] sm:$0xff]   ;;  %v970_v22 = vld [vmem:[#allocation2 + $0x10] sm:$0xff]  }
  0x15   :  { %873 = vmatpush3.bf16.msra.mxu1 %v955_v7  ;;  %852 = vmatprep.subr.bf16.mxu0 %v956_v8  ;;  %v971_v23 = vld [vmem:[#allocation2 + $0x90] sm:$0xff]   ;;  %v972_v24 = vld [vmem:[#allocation2 + $0x48] sm:$0xff]   ;;  %v976_v28 = vld [vmem:[#allocation2 + $0x40] sm:$0xff]  }
  0x16   :  { %874 = vmatprep.subr.bf16.mxu1 %v957_v9  ;;  %v973_v25 = vld [vmem:[#allocation2 + $0xc8] sm:$0xff]   ;;  %v977_v29 = vld [vmem:[#allocation2 + $0xc0] sm:$0xff]   ;;  %v37_v33 = vld [vmem:[%s1132_s0 + $0x18] sm:$0xff] }
  0x17   :  { %v974_v26 = vld [vmem:[#allocation2 + $0x8] sm:$0xff]   ;;  %v978_v30 = vld [vmem:[#allocation2] sm:$0xff]   ;;  %v984_v40 = vld [vmem:[#allocation2 + $0x178] sm:$0xff]   ;;  %v46_v41 = vunpack.c.l.bf16 %v37_v33  ;;  %v47_v42 = vunpack.c.h.bf16 %v37_v33 }
  0x18   :  { %853 = vmatpush3.bf16.msra.mxu0 %v958_v10  ;;  %v975_v27 = vld [vmem:[#allocation2 + $0x88] sm:$0xff]   ;;  %v979_v31 = vld [vmem:[#allocation2 + $0x80] sm:$0xff]   ;;  %v985_v43 = vld [vmem:[#allocation2 + $0x138] sm:$0xff]  }
  0x19   :  { %875 = vmatpush3.bf16.msra.mxu1 %v959_v11  ;;  %854 = vmatprep.subr.bf16.mxu0 %v960_v12  ;;  %v34_v32 = vld [vmem:[%s1132_s0] sm:$0xff]  ;;  %v35_v34 = vld [vmem:[%s1132_s0 + $0x8] sm:$0xff]  ;;  %v986_v46 = vld [vmem:[#allocation2 + $0x170] sm:$0xff]   ;;  %v58_v50 = vmul.f32 %v46_v41, %v46_v41  ;;  %v59_v51 = vmul.f32 %v47_v42, %v47_v42 }
  0x1a   :  { %876 = vmatprep.subr.bf16.mxu1 %v961_v13  ;;  %v38_v35 = vld [vmem:[%s1132_s0 + $0x20] sm:$0xff]  ;;  %v40_v36 = vunpack.c.l.bf16 %v34_v32  ;;  %v41_v37 = vunpack.c.h.bf16 %v34_v32  ;;  %v777_v38 = vcombine.high %v34_v32, %v37_v33  ;;  %v776_v44 = vcombine.low %v34_v32, %v37_v33  ;;  %v987_v53 = vld [vmem:[#allocation2 + $0x130] sm:$0xff]   ;;  %v988_v54 = vld [vmem:[#allocation2 + $0x168] sm:$0xff]  }
  0x1b   :  { %v779_v39 = vcombine.high %v35_v34, %v38_v35  ;;  %v778_v45 = vcombine.low %v35_v34, %v38_v35  ;;  %v42_v49 = vunpack.c.l.bf16 %v35_v34  ;;  %v48_v52 = vunpack.c.l.bf16 %v38_v35  ;;  %v989_v59 = vld [vmem:[#allocation2 + $0x128] sm:$0xff]   ;;  %v990_v62 = vld [vmem:[#allocation2 + $0x160] sm:$0xff]   ;;  %v992_v4 = vld [vmem:[#allocation2 + $0x158] sm:$0xff]  }
  0x1c   :  { %855 = vmatpush3.bf16.msra.mxu0 %v962_v14  ;;  %526 = vmatprep.mubr.bf16.mxu0 %v777_v38  ;;  %v52_v47 = vmul.f32 %v40_v36, %v40_v36  ;;  %v53_v48 = vmul.f32 %v41_v37, %v41_v37  ;;  %v43_v55 = vunpack.c.h.bf16 %v35_v34  ;;  %v49_v60 = vunpack.c.h.bf16 %v38_v35  ;;  %v991_v1 = vld [vmem:[#allocation2 + $0x120] sm:$0xff]   ;;  %v993_v5 = vld [vmem:[#allocation2 + $0x118] sm:$0xff]   ;;  %v36_v6 = vld [vmem:[%s1132_s0 + $0x10] sm:$0xff] }
  0x1d   :  { %877 = vmatpush3.bf16.msra.mxu1 %v963_v15  ;;  %856 = vmatprep.subr.bf16.mxu0 %v964_v16  ;;  %v54_v56 = vmul.f32 %v42_v49, %v42_v49  ;;  %v60_v58 = vmul.f32 %v48_v52, %v48_v52  ;;  %v71_v61 = vadd.f32 %v59_v51, %v58_v50  ;;  %v39_v7 = vld [vmem:[%s1132_s0 + $0x28] sm:$0xff]  ;;  %v994_v8 = vld [vmem:[#allocation2 + $0x150] sm:$0xff]   ;;  %v44_v10 = vunpack.c.l.bf16 %v36_v6 }
  0x1e   :  { %878 = vmatprep.subr.bf16.mxu1 %v965_v17  ;;  %567 = vmatprep.mubr.bf16.mxu1 %v779_v39  ;;  %v64_v57 = vadd.f32 %v53_v48, %v52_v47  ;;  %v55_v63 = vmul.f32 %v43_v55, %v43_v55  ;;  %v61_v2 = vmul.f32 %v49_v60, %v49_v60  ;;  %v45_v11 = vunpack.c.h.bf16 %v36_v6  ;;  %v1003_v60 = vld [vmem:[%s1134_s2 + $0x30] sm:$0xff]  }
  0x1f   :  { %v72_v3 = vadd.f32 %v71_v61, %v60_v58  ;;  %v781_v9 = vcombine.high %v36_v6, %v39_v7  ;;  %v50_v13 = vunpack.c.l.bf16 %v39_v7  ;;  %v51_v14 = vunpack.c.h.bf16 %v39_v7  ;;  %v1002_v58 = vld [vmem:[%s1134_s2 + $0x38] sm:$0xff]  }
  0x20   :  { %857 = vmatpush3.bf16.msra.mxu0 %v966_v18  ;;  %v65_v0 = vadd.f32 %v64_v57, %v54_v56  ;;  %v56_v16 = vmul.f32 %v44_v10, %v44_v10  ;;  %v57_v17 = vmul.f32 %v45_v11, %v45_v11  ;;  %v1009_v10 = vld [vmem:[%s1134_s2] sm:$0xff]  }
  0x21   :  { %879 = vmatpush3.bf16.msra.mxu1 %v967_v19  ;;  %858 = vmatprep.subr.bf16.mxu0 %v968_v20  ;;  %v73_v15 = vadd.f32 %v72_v3, %v61_v2  ;;  %v62_v18 = vmul.f32 %v50_v13, %v50_v13  ;;  %v63_v20 = vmul.f32 %v51_v14, %v51_v14 }
  0x22   :  { %880 = vmatprep.subr.bf16.mxu1 %v969_v21  ;;  %v66_v12 = vadd.f32 %v65_v0, %v55_v63  ;;  %v995_v21 = vld [vmem:[#allocation2 + $0x110] sm:$0xff]  }
  0x24   :  { %859 = vmatpush3.bf16.msra.mxu0 %v970_v22  ;;  %v67_v19 = vadd.f32 %v66_v12, %v56_v16  ;;  %v74_v22 = vadd.f32 %v73_v15, %v62_v18 }
  0x25   :  { %881 = vmatpush3.bf16.msra.mxu1 %v971_v23  ;;  %860 = vmatprep.subr.bf16.mxu0 %v972_v24  ;;  %v996_v23 = vld [vmem:[#allocation2 + $0x148] sm:$0xff]  }
  0x26   :  { %882 = vmatprep.subr.bf16.mxu1 %v973_v25  ;;  %v68_v24 = vadd.f32 %v67_v19, %v57_v17  ;;  %v75_v25 = vadd.f32 %v74_v22, %v63_v20 }
  0x28   :  { %861 = vmatpush3.bf16.msra.mxu0 %v974_v26  ;;  %69 = vadd.xlane.f32.xlu0 %v68_v24  ;;  %v997_v26 = vld [vmem:[#allocation2 + $0x108] sm:$0xff]  }
  0x29   :  { %883 = vmatpush3.bf16.msra.mxu1 %v975_v27  ;;  %862 = vmatprep.subr.bf16.mxu0 %v976_v28  ;;  %v998_v27 = vld [vmem:[#allocation2 + $0x140] sm:$0xff]  }
  0x2a   :  { %884 = vmatprep.subr.bf16.mxu1 %v977_v29  ;;  %v999_v28 = vld [vmem:[#allocation2 + $0x100] sm:$0xff]   ;;  %v780_v29 = vcombine.low %v36_v6, %v39_v7  ;;  %v1006_v7 = vld [vmem:[%s1134_s2 + $0x18] sm:$0xff]  }
  0x2b   :  { %v1005_v6 = vld [vmem:[%s1134_s2 + $0x20] sm:$0xff]  }
  0x2c   :  { %863 = vmatpush3.bf16.msra.mxu0 %v978_v30  ;;  %76 = vadd.xlane.f32.xlu0 %v75_v25 }
  0x2d   :  { %885 = vmatpush3.bf16.msra.mxu1 %v979_v31  ;;  %892 = vmatprep.subr.bf16.mxu0 %v984_v40 }
  0x2f   :  { %527 = vmatmul.mubr.bf16.vlgmr.msra.gmra.mxu0 %v776_v44 }
  0x30   :  { %568 = vmatmul.mubr.bf16.vlgmr.msra.gmra.mxu1 %v778_v45  ;;  %893 = vmatpush3.bf16.msra.mxu0 %v985_v43 }
  0x31   :  { %894 = vmatprep.subr.bf16.mxu0 %v986_v46  ;;  %608 = vmatprep.mubr.bf16.mxu0 %v781_v9  ;;  %v1008_v9 = vld [vmem:[%s1134_s2 + $0x8] sm:$0xff]  }
  0x34   :  { %895 = vmatpush3.bf16.msra.mxu0 %v987_v53 }
  0x35   :  { %896 = vmatprep.subr.bf16.mxu0 %v988_v54 }
  0x38   :  { %897 = vmatpush3.bf16.msra.mxu0 %v989_v59  ;;  %v1043_v59 = vmov 0.0  }
  0x39   :  { %898 = vmatprep.subr.bf16.mxu0 %v990_v62  ;;  %923 = vmatprep.subr.bf16.mxu1 %v1043_v59 }
  0x3a   :  { %924 = vmatpush3.bf16.msra.mxu1 %v1002_v58  ;;  %939 = vmatprep.mubr.msk.bf16.mxu1 %vm1044_vm0, %v1043_v59 }
  0x3b   :  { %925 = vmatprep.subr.bf16.mxu1 %v1043_v59 }
  0x3c   :  { %899 = vmatpush3.bf16.msra.mxu0 %v991_v1 }
  0x3d   :  { %900 = vmatprep.subr.bf16.mxu0 %v992_v4 }
  0x3e   :  { %926 = vmatpush3.bf16.msra.mxu1 %v1003_v60 }
  0x3f   :  { %927 = vmatprep.subr.bf16.mxu1 %v1043_v59 }
  0x40   :  { %901 = vmatpush3.bf16.msra.mxu0 %v993_v5  ;;  %v1004_v5 = vld [vmem:[%s1134_s2 + $0x28] sm:$0xff]  }
  0x41   :  { %902 = vmatprep.subr.bf16.mxu0 %v994_v8  ;;  %v1007_v8 = vld [vmem:[%s1134_s2 + $0x10] sm:$0xff]  }
  0x42   :  { %928 = vmatpush3.bf16.msra.mxu1 %v1004_v5 }
  0x43   :  { %929 = vmatprep.subr.bf16.mxu1 %v1043_v59 }
  0x44   :  { %903 = vmatpush3.bf16.msra.mxu0 %v995_v21 }
  0x45   :  { %904 = vmatprep.subr.bf16.mxu0 %v996_v23  ;;  %v830_v23 = vld [vmem:[%s1135_s3] ss:$0 sm:$0xff] }
  0x46   :  { %930 = vmatpush3.bf16.msra.mxu1 %v1005_v6 }
  0x47   :  { %931 = vmatprep.subr.bf16.mxu1 %v1043_v59 }
  0x48   :  { %905 = vmatpush3.bf16.msra.mxu0 %v997_v26 }
  0x49   :  { %906 = vmatprep.subr.bf16.mxu0 %v998_v27 }
  0x4a   :  { %932 = vmatpush3.bf16.msra.mxu1 %v1006_v7 }
  0x4b   :  { %933 = vmatprep.subr.bf16.mxu1 %v1043_v59 }
  0x4c   :  { %907 = vmatpush3.bf16.msra.mxu0 %v999_v28 }
  0x4e   :  { %934 = vmatpush3.bf16.msra.mxu1 %v1007_v8 }
  0x4f   :  { %609 = vmatmul.mubr.bf16.vlgmr.msra.gmra.mxu0 %v780_v29  ;;  %935 = vmatprep.subr.bf16.mxu1 %v1043_v59 }
  0x52   :  { %936 = vmatpush3.bf16.msra.mxu1 %v1008_v9 }
  0x53   :  { %937 = vmatprep.subr.bf16.mxu1 %v1043_v59 }
  0x56   :  { %938 = vmatpush3.bf16.msra.mxu1 %v1009_v10 }
  0xb1   :  { %v70_v31 = vpop.xlane.xlu0 %69 }
  0xb2   :  { %1010 = vrsqrt.f32 %v70_v31 }
  0xb5   :  { %v77_v35 = vpop.xlane.xlu0 %76 }
  0xb6   :  { %1012 = vrsqrt.f32 %v77_v35 }
  0xbf   :  { %v1011_v48 = vpop.eup %1010 }
  0xc3   :  { %v1013_v55 = vpop.eup %1012 }
  0xef   :  { %v864_v30 = vpop.f32.mrf.mxu0 }
  0xf0   :  { %v886_v32 = vpop.f32.mrf.mxu1 }
  0xf1   :  { %v865_v33 = vpop.f32.mrf.mxu0 }
  0xf2   :  { %v887_v34 = vpop.f32.mrf.mxu1  ;;  %v866_v39 = vadd.f32 %v865_v33, %v864_v30 }
  0xf3   :  { %v867_v36 = vpop.f32.mrf.mxu0  ;;  %v888_v40 = vadd.f32 %v887_v34, %v886_v32 }
  0xf4   :  { %v889_v37 = vpop.f32.mrf.mxu1 }
  0xf5   :  { %v868_v38 = vpop.f32.mrf.mxu0  ;;  %v570_v44 = vadd.f32 %v888_v40, %v866_v39 }
  0xf6   :  { %v890_v41 = vpop.f32.mrf.mxu1  ;;  %v869_v45 = vadd.f32 %v868_v38, %v867_v36 }
  0xf7   :  { %v891_v46 = vadd.f32 %v890_v41, %v889_v37 }
  0xf9   :  { %v573_v52 = vadd.f32 %v891_v46, %v869_v45 }
 0x10f   :  { %v908_v42 = vpop.f32.mrf.mxu0 }
 0x111   :  { %v909_v43 = vpop.f32.mrf.mxu0 }
 0x112   :  { %v910_v47 = vadd.f32 %v909_v43, %v908_v42 }
 0x113   :  { %v911_v49 = vpop.f32.mrf.mxu0 }
 0x114   :  { %v611_v50 = vadd.f32 %v910_v47, %v570_v44 }
 0x115   :  { %v912_v51 = vpop.f32.mrf.mxu0 }
 0x116   :  { %v913_v53 = vadd.f32 %v912_v51, %v911_v49  ;;  %v617_v54 = vmul.f32 %v1011_v48, %v611_v50 }
 0x118   :  { %v614_v56 = vadd.f32 %v913_v53, %v573_v52  ;;  %621 = vadd.xlane.f32.xlu1 %v617_v54  ;;  %619 = vst [vmem:[%s1136_s4] sm:$0xff] %v617_v54 }
 0x11a   :  { %v618_v57 = vmul.f32 %v1013_v55, %v614_v56 }
 0x11c   :  { %623 = vadd.xlane.f32.xlu1 %v618_v57  ;;  %620 = vst [vmem:[%s1136_s4 + $0x8] sm:$0xff] %v618_v57 }
 0x1a1   :  { %v622_v61 = vpop.xlane.xlu1 %621 }
 0x1a2   :  { %v626_v62 = vmul.f32 0.0078125, %v622_v61 }
 0x1a4   :  { %v628_v63 = vsub.f32 %v617_v54, %v626_v62 }
 0x1a5   :  { %v624_v0 = vpop.xlane.xlu1 %623 }
 0x1a6   :  { %v627_v1 = vmul.f32 0.0078125, %v624_v0  ;;  %v630_v2 = vmul.f32 %v628_v63, %v628_v63 }
 0x1a8   :  { %v629_v3 = vsub.f32 %v618_v57, %v627_v1  ;;  %632 = vadd.xlane.f32.xlu0 %v630_v2 }
 0x1aa   :  { %v631_v4 = vmul.f32 %v629_v3, %v629_v3 }
 0x1ac   :  { %634 = vadd.xlane.f32.xlu1 %v631_v4 }
 0x231   :  { %v633_v11 = vpop.xlane.xlu0 %632 }
 0x232   :  { %v636_v12 = vmul.f32 0.0078125, %v633_v11 }
 0x234   :  { %v638_v13 = vadd.f32 1e-05, %v636_v12 }
 0x235   :  { %v635_v14 = vpop.xlane.xlu1 %634 }
 0x236   :  { %v637_v15 = vmul.f32 0.0078125, %v635_v14  ;;  %1014 = vrsqrt.f32 %v638_v13 }
 0x238   :  { %v639_v16 = vadd.f32 1e-05, %v637_v15 }
 0x23a   :  { %1016 = vrsqrt.f32 %v639_v16 }
 0x243   :  { %v1015_v17 = vpop.eup %1014 }
 0x244   :  { %v642_v19 = vmul.f32 %v1015_v17, %v628_v63 }
 0x247   :  { %v1017_v18 = vpop.eup %1016 }
 0x248   :  { %v643_v20 = vmul.f32 %v1017_v18, %v629_v3 }
 0x24a   :  { %v644_v21 = vpack.c.bf16 %v643_v20, %v642_v19 }
 0x24c   :  { %940 = vmatmul.mubr.bf16.vlgmr.msra.gmra.mxu1 %v644_v21 }
 0x30c   :  { %v750_v22 = vpop.f32.mrf.mxu1 }
 0x30d   :  { %v751_v26 = vadd.f32 %v830_v23, %v750_v22 }
 0x30e   :  { %v941_v24 = vpop.f32.mrf.mxu1 }
 0x310   :  { %v753_v25 = vpop.f32.mrf.mxu1 }
 0x311   :  { %v754_v27 = vadd.f32 %v830_v23, %v753_v25 }
 0x312   :  { %v942_v28 = vpop.f32.mrf.mxu1 }
 0x313   :  { %v846_v29 = vpack.c.bf16 %v754_v27, %v751_v26 }
 0x315   :  { %847 = vst [vmem:[%s1137_s5] sm:$0xff] %v846_v29  }
 0x316   :  { %775 = vsyncpa [#allocation3], 1 }

</bundles_post_ra>
